<compile_context>
chip_gen: v7x
topology: tpu7x:2x2x1
jax: 0.10.0
libtpu: 0.0.40
codegen_flags: <defaults>
</compile_context>

<pallas_src>
import jax
import jax.numpy as jnp
from jax.experimental import pallas as pl
from jax.experimental.pallas import tpu as pltpu

HIDDEN_FEATURES = 10
INPUT_FEATURES = 2
N_CENTERS = 9

# layer dims: 2 -> 10 -> 10 -> 10 -> 10 -> 10 -> 10 -> 9, ReLU after every layer
LAYER_DIMS = [
    (INPUT_FEATURES, HIDDEN_FEATURES),
    (HIDDEN_FEATURES, HIDDEN_FEATURES),
    (HIDDEN_FEATURES, HIDDEN_FEATURES),
    (HIDDEN_FEATURES, HIDDEN_FEATURES),
    (HIDDEN_FEATURES, HIDDEN_FEATURES),
    (HIDDEN_FEATURES, HIDDEN_FEATURES),
    (HIDDEN_FEATURES, N_CENTERS),
]
N_LAYERS = len(LAYER_DIMS)
PAD = 16    # every layer width zero-padded to 16 so all params pack into one stack
LANE = 128  # batch tile granularity (lane axis)


def _round_up(n, m):
    return ((n + m - 1) // m) * m


def _mlp_kernel(x_ref, wt_ref, b_ref, out_ref):
    """Transposed dataflow: batch on the 128-lane axis.

    x_ref  : (INPUT_FEATURES, tb)  input activations, lane-dense
    wt_ref : (N_LAYERS, PAD, PAD)  wt_ref[l] = W_l^T (out, in), zero padded
    b_ref  : (N_LAYERS, PAD, 1)    biases, broadcast along the lane (batch) axis
    out_ref: (N_CENTERS, tb)       only the real class rows are written back
    """
    # Layer 0: (PAD, IN) @ (IN, tb) + bias, ReLU
    h = jnp.maximum(
        jnp.dot(wt_ref[0, :, :INPUT_FEATURES], x_ref[...],
                preferred_element_type=jnp.float32) + b_ref[0],
        0.0)
    # Layers 1..6: (PAD, PAD) @ (PAD, tb) + bias, ReLU (incl. after the last
    # layer, matching the PyTorch Sequential). Zero-padded rows/cols are inert.
    for l in range(1, N_LAYERS):
        h = jnp.maximum(
            jnp.dot(wt_ref[l], h, preferred_element_type=jnp.float32) + b_ref[l],
            0.0)
    out_ref[...] = h[:N_CENTERS, :]


def init_params(key):
    """PyTorch-nn.Linear-style init (U[-1/sqrt(fan_in), +]).

    Returns (wt_stack (7,PAD,PAD) with wt_stack[l]=W_l^T, b_stack (7,PAD,1),
    and the raw [(W_l (in,out), b_l)] list for the row-major reference)."""
    wt_stack = jnp.zeros((N_LAYERS, PAD, PAD), jnp.float32)
    b_stack = jnp.zeros((N_LAYERS, PAD, 1), jnp.float32)
    raw = []
    for i, (fan_in, fan_out) in enumerate(LAYER_DIMS):
        kw, kb = jax.random.split(jax.random.fold_in(key, i))
        bound = 1.0 / (fan_in ** 0.5)
        w_oi = jax.random.uniform(kw, (fan_out, fan_in), jnp.float32, -bound, bound)
        b = jax.random.uniform(kb, (fan_out,), jnp.float32, -bound, bound)
        raw.append((w_oi.T, b))  # (in, out) layout for the reference
        wt_stack = wt_stack.at[i, :fan_out, :fan_in].set(w_oi)  # W^T (torch layout)
        b_stack = b_stack.at[i, :fan_out, 0].set(b)
    return wt_stack, b_stack, raw


def multiclass_forward(x, wt_stack, b_stack, *, tile_b=16384):
    """Forward pass. x: (B, INPUT_FEATURES) f32 -> (B, N_CENTERS) f32."""
    B = x.shape[0]

    # Batch tile on the lane axis: multiple of 128, ~tile_b rows, and at least
    # 2 grid steps when the batch allows (so v7x shards across its 2 TCs).
    n_steps = max(2, pl.cdiv(B, tile_b))
    tb = max(LANE, _round_up(pl.cdiv(B, n_steps), LANE))
    Bp = _round_up(B, tb)
    grid = (Bp // tb,)

    # One-time transpose so the batch rides the 128-lane axis; padded columns
    # produce inert rows that are sliced off below.
    x_t = x.T
    if Bp != B:
        x_t = jnp.pad(x_t, ((0, 0), (0, Bp - B)))

    flops = 2 * N_LAYERS * PAD * PAD * Bp
    bytes_accessed = 4 * ((INPUT_FEATURES + N_CENTERS) * Bp
                          + wt_stack.size + b_stack.size)

    out_t = pl.pallas_call(
        _mlp_kernel,
        out_shape=jax.ShapeDtypeStruct((N_CENTERS, Bp), jnp.float32),
        grid_spec=pltpu.PrefetchScalarGridSpec(
            num_scalar_prefetch=0,
            grid=grid,
            in_specs=[
                # activation stream: one lane-dense batch tile per grid step
                pl.BlockSpec((INPUT_FEATURES, tb), lambda i: (0, i)),
                # packed params: constant index_map -> resident in VMEM
                pl.BlockSpec((N_LAYERS, PAD, PAD), lambda i: (0, 0, 0)),
                pl.BlockSpec((N_LAYERS, PAD, 1), lambda i: (0, 0, 0)),
            ],
            out_specs=pl.BlockSpec((N_CENTERS, tb), lambda i: (0, i)),
        ),
        compiler_params=pltpu.CompilerParams(
            dimension_semantics=("parallel",),       # shard batch tiles across TCs
            vmem_limit_bytes=32 * 1024 * 1024,       # safe on v5e/v6e/v7x
        ),
        cost_estimate=pl.CostEstimate(
            flops=flops, transcendentals=0, bytes_accessed=bytes_accessed),
    )(x_t, wt_stack, b_stack)

    # Back to the module's (B, N_CENTERS) layout.
    return out_t[:, :B].T


def reference_forward(x, raw_params):
    h = x
    for (w, b) in raw_params:
        h = jnp.maximum(h @ w + b, 0.0)  # ReLU after every layer, incl. the last
    return h


if __name__ == "__main__":
    key = jax.random.PRNGKey(0)
    kx, kp = jax.random.split(key)
    wt_stack, b_stack, raw = init_params(kp)

    # Case 1: tiny batch -> single grid step, heavy lane padding.
    x_small = jax.random.normal(jax.random.fold_in(kx, 0), (8, INPUT_FEATURES), jnp.float32)
    out_small = jax.block_until_ready(multiclass_forward(x_small, wt_stack, b_stack))
    ref_small = reference_forward(x_small, raw)
    assert out_small.shape == (8, N_CENTERS)
    assert jnp.allclose(out_small, ref_small, atol=1e-5, rtol=1e-5), "mismatch (small batch)"

    # Case 2: batch not a multiple of the tile -> multi-step grid, batch padding,
    # params resident in VMEM across steps.
    x_big = jax.random.normal(jax.random.fold_in(kx, 1), (300, INPUT_FEATURES), jnp.float32)
    out_big = jax.block_until_ready(multiclass_forward(x_big, wt_stack, b_stack, tile_b=128))
    ref_big = reference_forward(x_big, raw)
    assert out_big.shape == (300, N_CENTERS)
    assert jnp.allclose(out_big, ref_big, atol=1e-5, rtol=1e-5), "mismatch (tiled batch)"

    print("KERNEL_OK")
</pallas_src>

<mosaic_0001>
module attributes {stable_mosaic.version = 11 : i64} {
  func.func @_mlp_kernel(%arg0: i32, %arg1: memref<2x128xf32, #tpu.memory_space<vmem>>, %arg2: memref<7x16x16xf32, #tpu.memory_space<vmem>>, %arg3: memref<7x16x1xf32, #tpu.memory_space<vmem>>, %arg4: memref<9x128xf32, #tpu.memory_space<vmem>>) attributes {dimension_semantics = [#tpu.dimension_semantics<parallel>], iteration_bounds = array<i64: 1>, scalar_prefetch = 0 : i64, scratch_operands = 0 : i64, tpu.core_type = #tpu.core_type<tc>, window_params = [{transform_indices = @transform_0, window_bounds = array<i64: 2, 128>}, {pipeline_mode = #tpu.pipeline_mode<synchronous>, transform_indices = @transform_1, window_bounds = array<i64: 7, 16, 16>}, {pipeline_mode = #tpu.pipeline_mode<synchronous>, transform_indices = @transform_2, window_bounds = array<i64: 7, 16, 1>}, {transform_indices = @transform_3, window_bounds = array<i64: 9, 128>}]} {
    %c0 = arith.constant 0 : index
    %c0_0 = arith.constant 0 : index
    %c0_1 = arith.constant 0 : index
    %0 = vector.load %arg2[%c0, %c0_0, %c0_1] : memref<7x16x16xf32, #tpu.memory_space<vmem>>, vector<1x16x2xf32>
    %1 = vector.shape_cast %0 : vector<1x16x2xf32> to vector<16x2xf32>
    %c0_2 = arith.constant 0 : index
    %c0_3 = arith.constant 0 : index
    %2 = vector.load %arg1[%c0_2, %c0_3] : memref<2x128xf32, #tpu.memory_space<vmem>>, vector<2x128xf32>
    %cst = arith.constant dense<0.000000e+00> : vector<16x128xf32>
    %3 = tpu.matmul %1, %2, %cst {dimension_numbers = #tpu.dot_dimension_numbers<[1], [0], [0], [1], [0, 0, 1, 1], [], []>} : vector<16x2xf32>, vector<2x128xf32>, vector<16x128xf32> -> vector<16x128xf32>
    %c0_4 = arith.constant 0 : index
    %c0_5 = arith.constant 0 : index
    %c0_6 = arith.constant 0 : index
    %4 = vector.load %arg3[%c0_4, %c0_5, %c0_6] : memref<7x16x1xf32, #tpu.memory_space<vmem>>, vector<1x16x1xf32>
    %5 = vector.shape_cast %4 : vector<1x16x1xf32> to vector<16x1xf32>
    %6 = vector.broadcast %5 : vector<16x1xf32> to vector<16x128xf32>
    %7 = arith.addf %3, %6 : vector<16x128xf32>
    %cst_7 = arith.constant 0.000000e+00 : f32
    %8 = vector.broadcast %cst_7 : f32 to vector<16x128xf32>
    %9 = arith.maximumf %7, %8 : vector<16x128xf32>
    %c1 = arith.constant 1 : index
    %c0_8 = arith.constant 0 : index
    %c0_9 = arith.constant 0 : index
    %10 = vector.load %arg2[%c1, %c0_8, %c0_9] : memref<7x16x16xf32, #tpu.memory_space<vmem>>, vector<1x16x16xf32>
    %11 = vector.shape_cast %10 : vector<1x16x16xf32> to vector<16x16xf32>
    %cst_10 = arith.constant dense<0.000000e+00> : vector<16x128xf32>
    %12 = tpu.matmul %11, %9, %cst_10 {dimension_numbers = #tpu.dot_dimension_numbers<[1], [0], [0], [1], [0, 0, 1, 1], [], []>} : vector<16x16xf32>, vector<16x128xf32>, vector<16x128xf32> -> vector<16x128xf32>
    %c1_11 = arith.constant 1 : index
    %c0_12 = arith.constant 0 : index
    %c0_13 = arith.constant 0 : index
    %13 = vector.load %arg3[%c1_11, %c0_12, %c0_13] : memref<7x16x1xf32, #tpu.memory_space<vmem>>, vector<1x16x1xf32>
    %14 = vector.shape_cast %13 : vector<1x16x1xf32> to vector<16x1xf32>
    %15 = vector.broadcast %14 : vector<16x1xf32> to vector<16x128xf32>
    %16 = arith.addf %12, %15 : vector<16x128xf32>
    %cst_14 = arith.constant 0.000000e+00 : f32
    %17 = vector.broadcast %cst_14 : f32 to vector<16x128xf32>
    %18 = arith.maximumf %16, %17 : vector<16x128xf32>
    %c2 = arith.constant 2 : index
    %c0_15 = arith.constant 0 : index
    %c0_16 = arith.constant 0 : index
    %19 = vector.load %arg2[%c2, %c0_15, %c0_16] : memref<7x16x16xf32, #tpu.memory_space<vmem>>, vector<1x16x16xf32>
    %20 = vector.shape_cast %19 : vector<1x16x16xf32> to vector<16x16xf32>
    %cst_17 = arith.constant dense<0.000000e+00> : vector<16x128xf32>
    %21 = tpu.matmul %20, %18, %cst_17 {dimension_numbers = #tpu.dot_dimension_numbers<[1], [0], [0], [1], [0, 0, 1, 1], [], []>} : vector<16x16xf32>, vector<16x128xf32>, vector<16x128xf32> -> vector<16x128xf32>
    %c2_18 = arith.constant 2 : index
    %c0_19 = arith.constant 0 : index
    %c0_20 = arith.constant 0 : index
    %22 = vector.load %arg3[%c2_18, %c0_19, %c0_20] : memref<7x16x1xf32, #tpu.memory_space<vmem>>, vector<1x16x1xf32>
    %23 = vector.shape_cast %22 : vector<1x16x1xf32> to vector<16x1xf32>
    %24 = vector.broadcast %23 : vector<16x1xf32> to vector<16x128xf32>
    %25 = arith.addf %21, %24 : vector<16x128xf32>
    %cst_21 = arith.constant 0.000000e+00 : f32
    %26 = vector.broadcast %cst_21 : f32 to vector<16x128xf32>
    %27 = arith.maximumf %25, %26 : vector<16x128xf32>
    %c3 = arith.constant 3 : index
    %c0_22 = arith.constant 0 : index
    %c0_23 = arith.constant 0 : index
    %28 = vector.load %arg2[%c3, %c0_22, %c0_23] : memref<7x16x16xf32, #tpu.memory_space<vmem>>, vector<1x16x16xf32>
    %29 = vector.shape_cast %28 : vector<1x16x16xf32> to vector<16x16xf32>
    %cst_24 = arith.constant dense<0.000000e+00> : vector<16x128xf32>
    %30 = tpu.matmul %29, %27, %cst_24 {dimension_numbers = #tpu.dot_dimension_numbers<[1], [0], [0], [1], [0, 0, 1, 1], [], []>} : vector<16x16xf32>, vector<16x128xf32>, vector<16x128xf32> -> vector<16x128xf32>
    %c3_25 = arith.constant 3 : index
    %c0_26 = arith.constant 0 : index
    %c0_27 = arith.constant 0 : index
    %31 = vector.load %arg3[%c3_25, %c0_26, %c0_27] : memref<7x16x1xf32, #tpu.memory_space<vmem>>, vector<1x16x1xf32>
    %32 = vector.shape_cast %31 : vector<1x16x1xf32> to vector<16x1xf32>
    %33 = vector.broadcast %32 : vector<16x1xf32> to vector<16x128xf32>
    %34 = arith.addf %30, %33 : vector<16x128xf32>
    %cst_28 = arith.constant 0.000000e+00 : f32
    %35 = vector.broadcast %cst_28 : f32 to vector<16x128xf32>
    %36 = arith.maximumf %34, %35 : vector<16x128xf32>
    %c4 = arith.constant 4 : index
    %c0_29 = arith.constant 0 : index
    %c0_30 = arith.constant 0 : index
    %37 = vector.load %arg2[%c4, %c0_29, %c0_30] : memref<7x16x16xf32, #tpu.memory_space<vmem>>, vector<1x16x16xf32>
    %38 = vector.shape_cast %37 : vector<1x16x16xf32> to vector<16x16xf32>
    %cst_31 = arith.constant dense<0.000000e+00> : vector<16x128xf32>
    %39 = tpu.matmul %38, %36, %cst_31 {dimension_numbers = #tpu.dot_dimension_numbers<[1], [0], [0], [1], [0, 0, 1, 1], [], []>} : vector<16x16xf32>, vector<16x128xf32>, vector<16x128xf32> -> vector<16x128xf32>
    %c4_32 = arith.constant 4 : index
    %c0_33 = arith.constant 0 : index
    %c0_34 = arith.constant 0 : index
    %40 = vector.load %arg3[%c4_32, %c0_33, %c0_34] : memref<7x16x1xf32, #tpu.memory_space<vmem>>, vector<1x16x1xf32>
    %41 = vector.shape_cast %40 : vector<1x16x1xf32> to vector<16x1xf32>
    %42 = vector.broadcast %41 : vector<16x1xf32> to vector<16x128xf32>
    %43 = arith.addf %39, %42 : vector<16x128xf32>
    %cst_35 = arith.constant 0.000000e+00 : f32
    %44 = vector.broadcast %cst_35 : f32 to vector<16x128xf32>
    %45 = arith.maximumf %43, %44 : vector<16x128xf32>
    %c5 = arith.constant 5 : index
    %c0_36 = arith.constant 0 : index
    %c0_37 = arith.constant 0 : index
    %46 = vector.load %arg2[%c5, %c0_36, %c0_37] : memref<7x16x16xf32, #tpu.memory_space<vmem>>, vector<1x16x16xf32>
    %47 = vector.shape_cast %46 : vector<1x16x16xf32> to vector<16x16xf32>
    %cst_38 = arith.constant dense<0.000000e+00> : vector<16x128xf32>
    %48 = tpu.matmul %47, %45, %cst_38 {dimension_numbers = #tpu.dot_dimension_numbers<[1], [0], [0], [1], [0, 0, 1, 1], [], []>} : vector<16x16xf32>, vector<16x128xf32>, vector<16x128xf32> -> vector<16x128xf32>
    %c5_39 = arith.constant 5 : index
    %c0_40 = arith.constant 0 : index
    %c0_41 = arith.constant 0 : index
    %49 = vector.load %arg3[%c5_39, %c0_40, %c0_41] : memref<7x16x1xf32, #tpu.memory_space<vmem>>, vector<1x16x1xf32>
    %50 = vector.shape_cast %49 : vector<1x16x1xf32> to vector<16x1xf32>
    %51 = vector.broadcast %50 : vector<16x1xf32> to vector<16x128xf32>
    %52 = arith.addf %48, %51 : vector<16x128xf32>
    %cst_42 = arith.constant 0.000000e+00 : f32
    %53 = vector.broadcast %cst_42 : f32 to vector<16x128xf32>
    %54 = arith.maximumf %52, %53 : vector<16x128xf32>
    %c6 = arith.constant 6 : index
    %c0_43 = arith.constant 0 : index
    %c0_44 = arith.constant 0 : index
    %55 = vector.load %arg2[%c6, %c0_43, %c0_44] : memref<7x16x16xf32, #tpu.memory_space<vmem>>, vector<1x16x16xf32>
    %56 = vector.shape_cast %55 : vector<1x16x16xf32> to vector<16x16xf32>
    %cst_45 = arith.constant dense<0.000000e+00> : vector<16x128xf32>
    %57 = tpu.matmul %56, %54, %cst_45 {dimension_numbers = #tpu.dot_dimension_numbers<[1], [0], [0], [1], [0, 0, 1, 1], [], []>} : vector<16x16xf32>, vector<16x128xf32>, vector<16x128xf32> -> vector<16x128xf32>
    %c6_46 = arith.constant 6 : index
    %c0_47 = arith.constant 0 : index
    %c0_48 = arith.constant 0 : index
    %58 = vector.load %arg3[%c6_46, %c0_47, %c0_48] : memref<7x16x1xf32, #tpu.memory_space<vmem>>, vector<1x16x1xf32>
    %59 = vector.shape_cast %58 : vector<1x16x1xf32> to vector<16x1xf32>
    %60 = vector.broadcast %59 : vector<16x1xf32> to vector<16x128xf32>
    %61 = arith.addf %57, %60 : vector<16x128xf32>
    %cst_49 = arith.constant 0.000000e+00 : f32
    %62 = vector.broadcast %cst_49 : f32 to vector<16x128xf32>
    %63 = arith.maximumf %61, %62 : vector<16x128xf32>
    %64 = vector.extract_strided_slice %63 {offsets = [0, 0], sizes = [9, 128], strides = [1, 1]} : vector<16x128xf32> to vector<9x128xf32>
    %c0_50 = arith.constant 0 : index
    %c0_51 = arith.constant 0 : index
    %65 = vector.load %arg4[%c0_50, %c0_51] : memref<9x128xf32, #tpu.memory_space<vmem>>, vector<9x128xf32>
    tpu.vector_store %arg4[%c0_50, %c0_51], %64 {strides = array<i32>} : memref<9x128xf32, #tpu.memory_space<vmem>>, vector<9x128xf32>,
    return
  }
  func.func @transform_0(%arg0: i32) -> (i32, i32) {
    %c0_i32 = arith.constant 0 : i32
    %c0_i32_0 = arith.constant 0 : i32
    return %c0_i32, %arg0 : i32, i32
  }
  func.func @transform_1(%arg0: i32) -> (i32, i32, i32) {
    %c0_i32 = arith.constant 0 : i32
    %c0_i32_0 = arith.constant 0 : i32
    %c0_i32_1 = arith.constant 0 : i32
    %c0_i32_2 = arith.constant 0 : i32
    return %c0_i32, %c0_i32_0, %c0_i32_1 : i32, i32, i32
  }
  func.func @transform_2(%arg0: i32) -> (i32, i32, i32) {
    %c0_i32 = arith.constant 0 : i32
    %c0_i32_0 = arith.constant 0 : i32
    %c0_i32_1 = arith.constant 0 : i32
    %c0_i32_2 = arith.constant 0 : i32
    return %c0_i32, %c0_i32_0, %c0_i32_1 : i32, i32, i32
  }
  func.func @transform_3(%arg0: i32) -> (i32, i32) {
    %c0_i32 = arith.constant 0 : i32
    %c0_i32_0 = arith.constant 0 : i32
    return %c0_i32, %arg0 : i32, i32
  }
}

</mosaic_0001>

<bundles_post_ra>
// kernel: tpu_custom_call.1
= control target key start
LH: loop header
LB: loop body
LE: loop exit
PB: predicated region body
PF: predicated region fallthrough
CT: control target
= control target key end

     0   :  { %vm37_vm0 = vcmask 1041408   ;;  %vm30_vm1 = vcmask 15360   ;;  %v898_v4 = vmov 0   ;;  %s1033_s0 = inlined_call_operand.vmem [shape: f32[2,128], index: 0, kind: input, shape index: {}]   ;;  %s1034_s1 = inlined_call_operand.vmem [shape: f32[7,16,16], index: 1, kind: input, shape index: {}]   ;;  %s1035_s2 = inlined_call_operand.vmem [shape: f32[7,16,1], index: 2, kind: input, shape index: {}]   ;;  %s1036_s3 = inlined_call_operand.hbm [shape: f32[9,128], index: 3, kind: output, shape index: {}]  }
   0x1   :  { %v17_v0 = vld [vmem:[%s1033_s0] sm:$0x3]  ;;  %v16_v2 = vld [vmem:[%s1034_s1 + $0x8] sm:$0xff]  ;;  %872 = vset.pattern.permute.xlu0 %v898_v4 }
   0x2   :  { %v15_v1 = vld [vmem:[%s1034_s1] sm:$0xff]  ;;  %797 = vmatprep.subr.msk.mxu0 %vm37_vm0, %v17_v0 }
   0x3   :  { %799 = vmatprep.mubr.msk.f32.mxu0 %vm30_vm1, %v15_v1  ;;  %v18_v3 = vld [vmem:[%s1035_s2] sm:$0xff]  ;;  %798 = vmatpush3.msk.msra.mxu0 %vm37_vm0, %v17_v0 }
   0x4   :  { %800 = vmatmul.mubr.msk.f32.vlgmr.msra.gmra.mrb[0].mxu0 %vm30_vm1, %v16_v2  ;;  %22 = vperm.xlu0 %872, %v18_v3  }
   0x5   :  { %8 = vsyncpa [#allocation3], 0  ;;  %v19_v5 = vld [vmem:[%s1035_s2 + $0x8] sm:$0xff]  ;;  %873 = vset.pattern.permute.xlu1 %v898_v4  ;;  %v742_v6 = vld [vmem:[%s1035_s2 + $0x20] sm:$0xff]  ;;  %vm134_vm2 = vcmask 130048   ;;  %s899_s13 = smov [#allocation2]  }
   0x6   :  { %v748_v7 = vld [vmem:[%s1035_s2 + $0x30] sm:$0xff]  ;;  %v754_v8 = vld [vmem:[%s1035_s2 + $0x40] sm:$0xff]  ;;  %v737_v13 = vld [vmem:[%s1035_s2 + $0x18] sm:$0xff]  ;;  %s720_s14 = sshll.u32 %s899_s13, 4  ;;  %s721_s14 = int_to_ptr.vmem [resolvable:$true] %s720_s14 }
   0x7   :  { %v760_v9 = vld [vmem:[%s1035_s2 + $0x50] sm:$0xff]  ;;  %v766_v10 = vld [vmem:[%s1035_s2 + $0x60] sm:$0xff]  ;;  %v743_v14 = vld [vmem:[%s1035_s2 + $0x28] sm:$0xff]  ;;  %s874_s15 = scalar_lea.vmem %s721_s14, 256  ;;  %p879_p1 = scmp.lt.s32.totalorder %s721_s14, %s721_s14 }
   0x8   :  { %27 = vperm.xlu0 %872, %v19_v5   ;;  %v734_v11 = vld [vmem:[%s1034_s1 + $0x10] sm:$0xff]  ;;  %v749_v15 = vld [vmem:[%s1035_s2 + $0x38] sm:$0xff]  ;;  %v755_v16 = vld [vmem:[%s1035_s2 + $0x48] sm:$0xff]  ;;  %p875_p0 = scmp.ne.s32.totalorder %s721_s14, %s874_s15  ;;  %p880_p2 = scmp.lt.s32.totalorder %s874_s15, %s874_s15 }
   0x9   :  { %806 = vmatprep.mubr.msk.f32.mxu1 %vm134_vm2, %v734_v11  ;;  %v736_v12 = vld [vmem:[%s1035_s2 + $0x10] sm:$0xff]  ;;  %v761_v17 = vld [vmem:[%s1035_s2 + $0x58] sm:$0xff]  ;;  %v767_v18 = vld [vmem:[%s1035_s2 + $0x68] sm:$0xff] }
   0xa   :  { %126 = vperm.xlu1 %873, %v736_v12   ;;  %v735_v28 = vld [vmem:[%s1034_s1 + $0x18] sm:$0xff]  ;;  %v740_v29 = vld [vmem:[%s1034_s1 + $0x20] sm:$0xff]  ;;  %v741_v39 = vld [vmem:[%s1034_s1 + $0x28] sm:$0xff]  ;;  %p881_p3 = por %p880_p2, %p879_p1 }
   0xb   :  { %813 = vmatprep.mubr.msk.f32.mxu0 %vm134_vm2, %v740_v29  ;;  %v746_v40 = vld [vmem:[%s1034_s1 + $0x30] sm:$0xff]  ;;  %v747_v50 = vld [vmem:[%s1034_s1 + $0x38] sm:$0xff]  ;;  %v752_v51 = vld [vmem:[%s1034_s1 + $0x40] sm:$0xff] }
   0xc   :  { %226 = vperm.xlu0 %872, %v742_v6   ;;  %v753_v61 = vld [vmem:[%s1034_s1 + $0x48] sm:$0xff]  ;;  %v758_v62 = vld [vmem:[%s1034_s1 + $0x50] sm:$0xff]  ;;  %p882_p4 = pnand %p881_p3, %p875_p0 }
   0xe   :  { %131 = vperm.xlu1 %873, %v737_v13  }
  0x10   :  { %325 = vperm.xlu0 %872, %v748_v7  }
  0x12   :  { %231 = vperm.xlu1 %873, %v743_v14  }
  0x14   :  { %424 = vperm.xlu0 %872, %v754_v8   ;;  %v759_v8 = vld [vmem:[%s1034_s1 + $0x58] sm:$0xff] }
  0x16   :  { %330 = vperm.xlu1 %873, %v749_v15  }
  0x18   :  { %523 = vperm.xlu0 %872, %v760_v9   ;;  %v764_v9 = vld [vmem:[%s1034_s1 + $0x60] sm:$0xff] }
  0x1a   :  { %429 = vperm.xlu1 %873, %v755_v16  }
  0x1c   :  { %622 = vperm.xlu0 %872, %v766_v10  }
  0x1e   :  { %528 = vperm.xlu1 %873, %v761_v17  }
  0x22   :  { %627 = vperm.xlu1 %873, %v767_v18  }
  0x83   :  { %v23_v19 = vpop.permute.xlu0 %22 }
  0x87   :  { %v28_v20 = vpop.permute.xlu0 %27 }
  0x89   :  { %v127_v30 = vpop.permute.xlu1 %126 }
  0x8b   :  { %v227_v43 = vpop.permute.xlu0 %226 }
  0x8d   :  { %v132_v31 = vpop.permute.xlu1 %131 }
  0x8f   :  { %v326_v54 = vpop.permute.xlu0 %325 }
  0x91   :  { %v232_v41 = vpop.permute.xlu1 %231 }
  0x93   :  { %v425_v1 = vpop.permute.xlu0 %424 }
  0x95   :  { %v331_v52 = vpop.permute.xlu1 %330 }
  0x97   :  { %v524_v12 = vpop.permute.xlu0 %523 }
  0x99   :  { %v430_v63 = vpop.permute.xlu1 %429 }
  0x9d   :  { %v529_v10 = vpop.permute.xlu1 %528 }
  0xd7   :  { %v801_v21 = vpop.f32.mrb[0].mxu0 }
  0xd8   :  { %v113_v22 = vadd.f32 %v801_v21, %v28_v20  ;;  %v107_v23 = vpop.f32.mrb[1].mxu0  ;;  %v628_v20 = vpop.permute.xlu1 %627 }
  0xd9   :  { %v108_v24 = vadd.f32 %v107_v23, %v23_v19  ;;  %v765_v19 = vld [vmem:[%s1034_s1 + $0x68] sm:$0xff] }
  0xda   :  { %v117_v25 = vmax.f32 %v113_v22, 0.0  ;;  %v623_v22 = vpop.permute.xlu0 %622 }
  0xdb   :  { %v116_v26 = vmax.f32 %v108_v24, 0.0 }
  0xdd   :  { %v844_v27 = vpack.c.bf16 %v117_v25, %v116_v26 }
  0xdf   :  { %845 = vmatprep.subr.bf16.mxu1 %v844_v27 }
  0xe0   :  { %847 = vmatpush3.bf16.msra.mxu1 %v844_v27 }
  0xe3   :  { %807 = vmatmul.mubr.msk.f32.vlgmr.msra.gmra.mrb[0].mxu1 %vm134_vm2, %v735_v28 }
  0xe4   :  { %820 = vmatprep.mubr.msk.f32.mxu1 %vm134_vm2, %v746_v40 }
 0x1b6   :  { %v808_v32 = vpop.f32.mrb[0].mxu1 }
 0x1b7   :  { %v213_v33 = vadd.f32 %v808_v32, %v132_v31  ;;  %v207_v34 = vpop.f32.mrb[1].mxu1 }
 0x1b8   :  { %v208_v35 = vadd.f32 %v207_v34, %v127_v30 }
 0x1b9   :  { %v217_v36 = vmax.f32 %v213_v33, 0.0 }
 0x1ba   :  { %v216_v37 = vmax.f32 %v208_v35, 0.0 }
 0x1bc   :  { %v848_v38 = vpack.c.bf16 %v217_v36, %v216_v37 }
 0x1be   :  { %849 = vmatprep.subr.bf16.mxu0 %v848_v38 }
 0x1bf   :  { %851 = vmatpush3.bf16.msra.mxu0 %v848_v38 }
 0x1c2   :  { %814 = vmatmul.mubr.msk.f32.vlgmr.msra.gmra.mrb[2].mxu0 %vm134_vm2, %v741_v39 }
 0x1c3   :  { %827 = vmatprep.mubr.msk.f32.mxu0 %vm134_vm2, %v752_v51 }
 0x295   :  { %v815_v42 = vpop.f32.mrb[2].mxu0 }
 0x296   :  { %v312_v44 = vadd.f32 %v815_v42, %v232_v41  ;;  %v306_v45 = vpop.f32.mrb[3].mxu0 }
 0x297   :  { %v307_v46 = vadd.f32 %v306_v45, %v227_v43 }
 0x298   :  { %v316_v47 = vmax.f32 %v312_v44, 0.0 }
 0x299   :  { %v315_v48 = vmax.f32 %v307_v46, 0.0 }
 0x29b   :  { %v852_v49 = vpack.c.bf16 %v316_v47, %v315_v48 }
 0x29d   :  { %853 = vmatprep.subr.bf16.mxu1 %v852_v49 }
 0x29e   :  { %855 = vmatpush3.bf16.msra.mxu1 %v852_v49 }
 0x2a1   :  { %821 = vmatmul.mubr.msk.f32.vlgmr.msra.gmra.mrb[2].mxu1 %vm134_vm2, %v747_v50 }
 0x2a2   :  { %834 = vmatprep.mubr.msk.f32.mxu1 %vm134_vm2, %v758_v62 }
 0x374   :  { %v822_v53 = vpop.f32.mrb[2].mxu1 }
 0x375   :  { %v411_v55 = vadd.f32 %v822_v53, %v331_v52  ;;  %v405_v56 = vpop.f32.mrb[3].mxu1 }
 0x376   :  { %v406_v57 = vadd.f32 %v405_v56, %v326_v54 }
 0x377   :  { %v415_v58 = vmax.f32 %v411_v55, 0.0 }
 0x378   :  { %v414_v59 = vmax.f32 %v406_v57, 0.0 }
 0x37a   :  { %v856_v60 = vpack.c.bf16 %v415_v58, %v414_v59 }
 0x37c   :  { %857 = vmatprep.subr.bf16.mxu0 %v856_v60 }
 0x37d   :  { %859 = vmatpush3.bf16.msra.mxu0 %v856_v60 }
 0x380   :  { %828 = vmatmul.mubr.msk.f32.vlgmr.msra.gmra.mrb[4].mxu0 %vm134_vm2, %v753_v61 }
 0x381   :  { %841 = vmatprep.mubr.msk.f32.mxu0 %vm134_vm2, %v764_v9 }
 0x453   :  { %v829_v0 = vpop.f32.mrb[4].mxu0 }
 0x454   :  { %v510_v2 = vadd.f32 %v829_v0, %v430_v63  ;;  %v504_v3 = vpop.f32.mrb[5].mxu0 }
 0x455   :  { %v505_v4 = vadd.f32 %v504_v3, %v425_v1 }
 0x456   :  { %v514_v5 = vmax.f32 %v510_v2, 0.0 }
 0x457   :  { %v513_v6 = vmax.f32 %v505_v4, 0.0 }
 0x459   :  { %v860_v7 = vpack.c.bf16 %v514_v5, %v513_v6 }
 0x45b   :  { %861 = vmatprep.subr.bf16.mxu1 %v860_v7 }
 0x45c   :  { %863 = vmatpush3.bf16.msra.mxu1 %v860_v7 }
 0x45f   :  { %835 = vmatmul.mubr.msk.f32.vlgmr.msra.gmra.mrb[4].mxu1 %vm134_vm2, %v759_v8 }
 0x532   :  { %v836_v11 = vpop.f32.mrb[4].mxu1 }
 0x533   :  { %v609_v13 = vadd.f32 %v836_v11, %v529_v10  ;;  %v603_v14 = vpop.f32.mrb[5].mxu1 }
 0x534   :  { %v604_v15 = vadd.f32 %v603_v14, %v524_v12 }
 0x535   :  { %v613_v16 = vmax.f32 %v609_v13, 0.0 }
 0x536   :  { %v612_v17 = vmax.f32 %v604_v15, 0.0 }
 0x538   :  { %v864_v18 = vpack.c.bf16 %v613_v16, %v612_v17 }
 0x53a   :  { %865 = vmatprep.subr.bf16.mxu0 %v864_v18 }
 0x53b   :  { %867 = vmatpush3.bf16.msra.mxu0 %v864_v18 }
 0x53e   :  { %842 = vmatmul.mubr.msk.f32.vlgmr.msra.gmra.mrb[6].mxu0 %vm134_vm2, %v765_v19 }
 0x611   :  { %v843_v21 = vpop.f32.mrb[6].mxu0 }
 0x612   :  { %v708_v23 = vadd.f32 %v843_v21, %v628_v20  ;;  %v702_v24 = vpop.f32.mrb[7].mxu0 }
 0x613   :  { %v703_v25 = vadd.f32 %v702_v24, %v623_v22 }
 0x614   :  { %v712_v26 = vmax.f32 %v708_v23, 0.0 }
 0x615   :  { %v711_v27 = vmax.f32 %v703_v25, 0.0 }
 0x616   :  { %714 = vst [vmem:[#allocation2 + $0x8] sm:$0x1] %v712_v26 }
 0x617   :  { %713 = vst [vmem:[#allocation2] sm:$0xff] %v711_v27 }
 0x618   :  { %885 = shalt.err (!%p882_p4)
}
 0x619   :  { %s886_s17 = scalar_lea.hbm %s1036_s3, 256 }
 0x61a   :  { %p887_p5 = scmp.ne.s32.totalorder %s1036_s3, %s886_s17  ;;  %p890_p6 = scmp.lt.u32.totalorder %s886_s17, %s1036_s3 }
 0x61c   :  { %p892_p7 = pnand %p890_p6, %p887_p5 }
 0x61e   :  { %895 = shalt.err (!%p892_p7)
}
 0x61f   :  { %s900_s21 = smov 128   ;;  %s901_s2 = smov 8  }
 0x620   :  { %726 = dma.vmem_to_hbm [thread:$0]  %s721_s14, 256, %s1036_s3, [#allocation3], %s900_s21, %s900_s21, %s901_s2  }
 0x621   :  { %896 = dma.done.wait [#allocation3], 256  }
 0x622   :  { %897 = vsyncadd [#allocation3], 4294967040 }
 0x623   :  { %730 = vsyncpa [#allocation3], 1 }

</bundles_post_ra>
